<compile_context>
chip_gen: v6e
topology: v6e:2x2x1
jax: 0.10.0
libtpu: 0.0.40
codegen_flags: <defaults>
</compile_context>

<pallas_src>
import math
from functools import partial

import jax
import jax.numpy as jnp
from jax import lax
from jax.experimental import pallas as pl
from jax.experimental.pallas import tpu as pltpu

BOARD_ROWS = 31   # 19 + 31 == 50 == output_linear1 fan-in
BOARD_COLS = 28   # map_convert_linear1 fan-in
STATE_FEATS = 19  # linear2 fan-out

PACK = 4                      # board rows packed along the contraction dim
PACK_K = PACK * BOARD_COLS    # 112
GROUP = 64                    # 50 real + 14 zero rows, sublane aligned
PACK_M = PACK * GROUP         # 256

_VMEM_LIMIT = 32 * 1024 * 1024


def _round_up(x, m):
    return ((x + m - 1) // m) * m


# --------------------------------------------------------------------------
# Kernels
# --------------------------------------------------------------------------
def _board_feature_kernel(board_ref, wm1_ref, bm1_ref, wm2_ref, bm2_ref, out_ref):
    """relu(L2(relu(L1(board)))) with PACK board rows packed along K.

    board_ref : (TP, 112)  f32 (or bf16)  -- 4 board rows per packed row
    wm1_ref   : (256, 112) bf16           -- block-diagonal layer-1 weight
    bm1_ref   : (256, 1)   f32            -- layer-1 bias (zero on pad rows)
    wm2_ref   : (256, 1)   f32            -- layer-2 weight col (zero on pad rows)
    bm2_ref   : (1, 1)     f32
    out_ref   : (4, TP)    f32            -- out[g, j] = feature of board row 4*j+g
    """
    b = board_ref[...].astype(jnp.bfloat16)
    # h[m, j] = sum_c wm1[m, c] * b[j, c]   (bf16 operands, f32 accumulate)
    h = lax.dot_general(
        wm1_ref[...], b,
        dimension_numbers=(((1,), (1,)), ((), ())),
        preferred_element_type=jnp.float32)                       # (256, TP)
    h = jnp.maximum(h + bm1_ref[...], 0.0)
    # Layer 2 has a single output per board row: do it on the VPU/XLU
    # (elementwise mul + aligned 64-sublane group reductions), not an M=1 matmul.
    hw = h * wm2_ref[...]                                         # (256, TP)
    z = jnp.concatenate(
        [jnp.sum(hw[g * GROUP:(g + 1) * GROUP, :], axis=0, keepdims=True)
         for g in range(PACK)],
        axis=0)                                                   # (4, TP)
    out_ref[...] = jnp.maximum(z + bm2_ref[...], 0.0)


def _qnet_head_kernel(state_ref, bfeat_ref,
                      w1_ref, b1_ref, w2_ref, b2_ref,
                      wo1s_ref, wo1b_ref, bo1_ref, wo_ref, bo_ref,
                      out_ref):
    """State branch + implicit concat + output head for one batch tile."""
    s = jnp.dot(state_ref[...], w1_ref[...], preferred_element_type=jnp.float32)
    s = jnp.maximum(s + b1_ref[...], 0.0)
    s = jnp.dot(s, w2_ref[...], preferred_element_type=jnp.float32)
    s = jnp.maximum(s + b2_ref[...], 0.0)
    # cat([s, bfeat], -1) @ Wo1.T == s @ Wo1[:, :19].T + bfeat @ Wo1[:, 19:].T
    x = (jnp.dot(s, wo1s_ref[...], preferred_element_type=jnp.float32)
         + jnp.dot(bfeat_ref[...], wo1b_ref[...], preferred_element_type=jnp.float32)
         + bo1_ref[...])
    x = jnp.maximum(x, 0.0)
    out_ref[...] = (jnp.dot(x, wo_ref[...], preferred_element_type=jnp.float32)
                    + bo_ref[...])


# --------------------------------------------------------------------------
# Parameters
# --------------------------------------------------------------------------
def init_params(key, input_size, hidden_size, output_size=4):
    """Deterministic PyTorch-style (uniform +/- 1/sqrt(fan_in)) init."""
    def linear(k, fan_in, fan_out):
        kw, kb = jax.random.split(k)
        bound = 1.0 / math.sqrt(fan_in)
        w = jax.random.uniform(kw, (fan_out, fan_in), jnp.float32, -bound, bound)
        b = jax.random.uniform(kb, (fan_out,), jnp.float32, -bound, bound)
        return w, b

    ks = jax.random.split(key, 6)
    return {
        "linear1": linear(ks[0], input_size, hidden_size),
        "linear2": linear(ks[1], hidden_size, STATE_FEATS),
        "map_convert_linear1": linear(ks[2], BOARD_COLS, 50),
        "map_convert_linear2": linear(ks[3], 50, 1),
        "output_linear1": linear(ks[4], 50, hidden_size),
        "output": linear(ks[5], hidden_size, output_size),
    }


def prep_params(params):
    """One-time weight prep hoisted out of the per-call forward path."""
    w1, b1 = params["linear1"]
    w2, b2 = params["linear2"]
    wm1, bm1 = params["map_convert_linear1"]     # (50, 28), (50,)
    wm2, bm2 = params["map_convert_linear2"]     # (1, 50),  (1,)
    wo1, bo1 = params["output_linear1"]
    wo, bo = params["output"]
    f32 = lambda x: jnp.asarray(x, jnp.float32)

    # Board branch: block-diagonal layer-1 weight so PACK board rows share one
    # K=112 contraction; each group padded to 64 rows (sublane aligned); pad
    # rows get zero weight / bias / layer-2 weight so they contribute nothing.
    wm1 = f32(wm1); bm1 = f32(bm1); wm2 = f32(wm2)
    wm1_blk = jnp.zeros((PACK_M, PACK_K), jnp.float32)
    bm1_blk = jnp.zeros((PACK_M, 1), jnp.float32)
    wm2_col = jnp.zeros((PACK_M, 1), jnp.float32)
    for g in range(PACK):
        r = g * GROUP
        wm1_blk = wm1_blk.at[r:r + 50, g * BOARD_COLS:(g + 1) * BOARD_COLS].set(wm1)
        bm1_blk = bm1_blk.at[r:r + 50, 0].set(bm1)
        wm2_col = wm2_col.at[r:r + 50, 0].set(wm2[0])

    return {
        # board branch (MXU operand in bf16; biases / layer-2 column in f32)
        "wm1_blk": wm1_blk.astype(jnp.bfloat16),
        "bm1_blk": bm1_blk,
        "wm2_col": wm2_col,
        "bm2": f32(bm2).reshape(1, 1),
        # head: pre-transposed to (in, out), biases as (1, out) rows,
        # output_linear1 pre-split into state / board halves.
        "w1t": f32(w1).T, "b1": f32(b1).reshape(1, -1),
        "w2t": f32(w2).T, "b2": f32(b2).reshape(1, -1),
        "wo1st": f32(wo1)[:, :STATE_FEATS].T,
        "wo1bt": f32(wo1)[:, STATE_FEATS:].T,
        "bo1": f32(bo1).reshape(1, -1),
        "wot": f32(wo).T, "bo": f32(bo).reshape(1, -1),
    }


# --------------------------------------------------------------------------
# Forward
# --------------------------------------------------------------------------
@partial(jax.jit, static_argnames=("board_tile_p", "head_batch_tile"))
def linear_qnet_forward(prepped, state, board, *,
                        board_tile_p=3968, head_batch_tile=1024):
    """board_tile_p: packed-row tile (multiple of 128); 3968 ~ 512 batch rows,
    sized for v7x's 64 MiB VMEM.  On v5e/v6e (128 MiB) it can be raised (and a
    third buffer added via pipeline_mode=pl.Buffered(3)) if the DMA is exposed."""
    B = state.shape[0]
    state = state.astype(jnp.float32)
    if board.dtype != jnp.bfloat16:           # keep bf16 inputs as-is (half DMA)
        board = board.astype(jnp.float32)     # otherwise cast to bf16 in-kernel
    assert board.shape == (B, BOARD_ROWS, BOARD_COLS)

    in_size = state.shape[1]
    hid = prepped["w1t"].shape[1]
    n_out = prepped["wot"].shape[1]

    # ---------------- board-feature kernel ----------------------------------
    N = B * BOARD_ROWS
    N_pad = _round_up(N, PACK)
    board2d = board.reshape(N, BOARD_COLS)
    if N_pad != N:
        # NOTE: this pad copies the board once; prefer B % 4 == 0 in production.
        board2d = jnp.pad(board2d, ((0, N_pad - N), (0, 0)))
    board_packed = board2d.reshape(N_pad // PACK, PACK_K)  # free contiguous reshape
    P = N_pad // PACK

    if P > board_tile_p:
        tp = board_tile_p                        # multiple of 128
    elif P >= 256:
        tp = _round_up(pl.cdiv(P, 2), 128)       # >=2 grid steps (v7x megacore)
    else:
        tp = P                                   # single full-extent block
    grid1 = (pl.cdiv(P, tp),)

    bweights = (prepped["wm1_blk"], prepped["bm1_blk"],
                prepped["wm2_col"], prepped["bm2"])
    bweight_specs = [pl.BlockSpec(w.shape, lambda i: (0, 0)) for w in bweights]

    cost1 = pl.CostEstimate(
        flops=2 * P * PACK_M * PACK_K + 3 * P * PACK_M,
        transcendentals=0,
        bytes_accessed=(board_packed.dtype.itemsize * P * PACK_K
                        + 4 * PACK * P
                        + sum(int(w.size) * w.dtype.itemsize for w in bweights)))

    bfeat_gp = pl.pallas_call(
        _board_feature_kernel,
        out_shape=jax.ShapeDtypeStruct((PACK, P), jnp.float32),
        grid_spec=pltpu.PrefetchScalarGridSpec(
            num_scalar_prefetch=0,
            grid=grid1,
            in_specs=[pl.BlockSpec((tp, PACK_K), lambda i: (i, 0))]
                     + bweight_specs,
            out_specs=pl.BlockSpec((PACK, tp), lambda i: (0, i)),
        ),
        compiler_params=pltpu.CompilerParams(
            dimension_semantics=("parallel",),
            vmem_limit_bytes=_VMEM_LIMIT),
        cost_estimate=cost1,
    )(board_packed, *bweights)

    # Un-interleave the groups: element (g, j) is the feature of board row 4*j+g.
    bfeat = bfeat_gp.T.reshape(N_pad)[:N].reshape(B, BOARD_ROWS)

    # ---------------- state branch + concat + head ---------------------------
    if B > head_batch_tile:
        tb2 = head_batch_tile                    # multiple of 8
    elif B >= 16:
        tb2 = _round_up(pl.cdiv(B, 2), 8)        # >=2 grid steps (v7x megacore)
    else:
        tb2 = B
    grid2 = (pl.cdiv(B, tb2),)

    hweights = (prepped["w1t"], prepped["b1"], prepped["w2t"], prepped["b2"],
                prepped["wo1st"], prepped["wo1bt"], prepped["bo1"],
                prepped["wot"], prepped["bo"])
    hweight_specs = [pl.BlockSpec(w.shape, lambda i: (0, 0)) for w in hweights]

    cost2 = pl.CostEstimate(
        flops=2 * B * (in_size * hid + hid * STATE_FEATS + 50 * hid + hid * n_out),
        transcendentals=0,
        bytes_accessed=4 * (B * (in_size + BOARD_ROWS + n_out)
                            + sum(int(w.size) for w in hweights)))

    out = pl.pallas_call(
        _qnet_head_kernel,
        out_shape=jax.ShapeDtypeStruct((B, n_out), jnp.float32),
        grid_spec=pltpu.PrefetchScalarGridSpec(
            num_scalar_prefetch=0,
            grid=grid2,
            in_specs=[pl.BlockSpec((tb2, in_size), lambda i: (i, 0)),
                      pl.BlockSpec((tb2, BOARD_ROWS), lambda i: (i, 0))]
                     + hweight_specs,
            out_specs=pl.BlockSpec((tb2, n_out), lambda i: (i, 0)),
        ),
        compiler_params=pltpu.CompilerParams(
            dimension_semantics=("parallel",),
            vmem_limit_bytes=_VMEM_LIMIT),
        cost_estimate=cost2,
    )(state, bfeat, *hweights)
    return out


# --------------------------------------------------------------------------
# Pure-JAX reference (mirrors the PyTorch module) + harness
# --------------------------------------------------------------------------
def _reference_forward(params, state, board):
    def lin(p, x):
        w, b = p
        return x @ w.T + b
    b = jax.nn.relu(lin(params["map_convert_linear1"], board))
    b = jax.nn.relu(lin(params["map_convert_linear2"], b))
    b = jnp.squeeze(b, -1)
    s = jax.nn.relu(lin(params["linear1"], state))
    s = jax.nn.relu(lin(params["linear2"], s))
    x = jnp.concatenate([s, b], -1)
    x = jax.nn.relu(lin(params["output_linear1"], x))
    return lin(params["output"], x)


if __name__ == "__main__":
    input_size, hidden_size, output_size = 16, 32, 4

    key = jax.random.PRNGKey(0)
    kp, kd = jax.random.split(key)

    params = init_params(kp, input_size, hidden_size, output_size)
    prepped = prep_params(params)

    # batch=4: aligned path; batch=6: B % 4 != 0 pad path;
    # batch=40: ragged tail blocks + 2-step grids (megacore split).
    for batch in (4, 6, 40):
        ks, kb = jax.random.split(jax.random.fold_in(kd, batch))
        state = jax.random.normal(ks, (batch, input_size), jnp.float32)
        board = jax.random.normal(kb, (batch, BOARD_ROWS, BOARD_COLS), jnp.float32)

        out = jax.block_until_ready(linear_qnet_forward(prepped, state, board))
        ref = _reference_forward(params, state, board)

        assert out.shape == (batch, output_size)
        err = float(jnp.max(jnp.abs(out - ref)))
        # bf16 board-branch operands (f32 accumulation) -> loosened tolerance.
        assert jnp.allclose(out, ref, atol=2e-2, rtol=2e-2), (batch, err)

    print("KERNEL_OK")
</pallas_src>

<mosaic_0001>
module attributes {stable_mosaic.version = 11 : i64} {
  func.func @_board_feature_kernel(%arg0: i32, %arg1: memref<31x112xf32, #tpu.memory_space<vmem>>, %arg2: memref<256x112xbf16, #tpu.memory_space<vmem>>, %arg3: memref<256x1xf32, #tpu.memory_space<vmem>>, %arg4: memref<256x1xf32, #tpu.memory_space<vmem>>, %arg5: memref<1x1xf32, #tpu.memory_space<vmem>>, %arg6: memref<4x31xf32, #tpu.memory_space<vmem>>) attributes {dimension_semantics = [#tpu.dimension_semantics<parallel>], iteration_bounds = array<i64: 1>, scalar_prefetch = 0 : i64, scratch_operands = 0 : i64, tpu.core_type = #tpu.core_type<tc>, window_params = [{transform_indices = @transform_0, window_bounds = array<i64: 31, 112>}, {pipeline_mode = #tpu.pipeline_mode<synchronous>, transform_indices = @transform_1, window_bounds = array<i64: 256, 112>}, {pipeline_mode = #tpu.pipeline_mode<synchronous>, transform_indices = @transform_2, window_bounds = array<i64: 256, 1>}, {pipeline_mode = #tpu.pipeline_mode<synchronous>, transform_indices = @transform_3, window_bounds = array<i64: 256, 1>}, {pipeline_mode = #tpu.pipeline_mode<synchronous>, transform_indices = @transform_4, window_bounds = array<i64: 1, 1>}, {transform_indices = @transform_5, window_bounds = array<i64: 4, 31>}]} {
    %c0 = arith.constant 0 : index
    %c0_0 = arith.constant 0 : index
    %0 = vector.load %arg1[%c0, %c0_0] : memref<31x112xf32, #tpu.memory_space<vmem>>, vector<31x112xf32>
    %1 = arith.truncf %0 : vector<31x112xf32> to vector<31x112xbf16>
    %c0_1 = arith.constant 0 : index
    %c0_2 = arith.constant 0 : index
    %2 = vector.load %arg2[%c0_1, %c0_2] : memref<256x112xbf16, #tpu.memory_space<vmem>>, vector<256x112xbf16>
    %cst = arith.constant dense<0.000000e+00> : vector<256x31xf32>
    %3 = tpu.matmul %2, %1, %cst {dimension_numbers = #tpu.dot_dimension_numbers<[1], [1], [0], [0], [0, 0, 1, 0], [], []>} : vector<256x112xbf16>, vector<31x112xbf16>, vector<256x31xf32> -> vector<256x31xf32>
    %c0_3 = arith.constant 0 : index
    %c0_4 = arith.constant 0 : index
    %4 = vector.load %arg3[%c0_3, %c0_4] : memref<256x1xf32, #tpu.memory_space<vmem>>, vector<256x1xf32>
    %5 = vector.broadcast %4 : vector<256x1xf32> to vector<256x31xf32>
    %6 = arith.addf %3, %5 : vector<256x31xf32>
    %cst_5 = arith.constant 0.000000e+00 : f32
    %7 = vector.broadcast %cst_5 : f32 to vector<256x31xf32>
    %8 = arith.maximumf %6, %7 : vector<256x31xf32>
    %c0_6 = arith.constant 0 : index
    %c0_7 = arith.constant 0 : index
    %9 = vector.load %arg4[%c0_6, %c0_7] : memref<256x1xf32, #tpu.memory_space<vmem>>, vector<256x1xf32>
    %10 = vector.broadcast %9 : vector<256x1xf32> to vector<256x31xf32>
    %11 = arith.mulf %8, %10 : vector<256x31xf32>
    %12 = vector.extract_strided_slice %11 {offsets = [0, 0], sizes = [64, 31], strides = [1, 1]} : vector<256x31xf32> to vector<64x31xf32>
    %cst_8 = arith.constant dense<0.000000e+00> : vector<31xf32>
    %13 = vector.multi_reduction <add>, %12, %cst_8 [0] : vector<64x31xf32> to vector<31xf32>
    %14 = vector.shape_cast %13 : vector<31xf32> to vector<1x31xf32>
    %15 = vector.extract_strided_slice %11 {offsets = [64, 0], sizes = [64, 31], strides = [1, 1]} : vector<256x31xf32> to vector<64x31xf32>
    %cst_9 = arith.constant dense<0.000000e+00> : vector<31xf32>
    %16 = vector.multi_reduction <add>, %15, %cst_9 [0] : vector<64x31xf32> to vector<31xf32>
    %17 = vector.shape_cast %16 : vector<31xf32> to vector<1x31xf32>
    %18 = vector.extract_strided_slice %11 {offsets = [128, 0], sizes = [64, 31], strides = [1, 1]} : vector<256x31xf32> to vector<64x31xf32>
    %cst_10 = arith.constant dense<0.000000e+00> : vector<31xf32>
    %19 = vector.multi_reduction <add>, %18, %cst_10 [0] : vector<64x31xf32> to vector<31xf32>
    %20 = vector.shape_cast %19 : vector<31xf32> to vector<1x31xf32>
    %21 = vector.extract_strided_slice %11 {offsets = [192, 0], sizes = [64, 31], strides = [1, 1]} : vector<256x31xf32> to vector<64x31xf32>
    %cst_11 = arith.constant dense<0.000000e+00> : vector<31xf32>
    %22 = vector.multi_reduction <add>, %21, %cst_11 [0] : vector<64x31xf32> to vector<31xf32>
    %23 = vector.shape_cast %22 : vector<31xf32> to vector<1x31xf32>
    %24 = tpu.concatenate %14, %17, %20, %23 in 0 : vector<1x31xf32>, vector<1x31xf32>, vector<1x31xf32>, vector<1x31xf32> -> vector<4x31xf32>
    %c0_12 = arith.constant 0 : index
    %c0_13 = arith.constant 0 : index
    %25 = vector.load %arg5[%c0_12, %c0_13] : memref<1x1xf32, #tpu.memory_space<vmem>>, vector<1x1xf32>
    %26 = vector.broadcast %25 : vector<1x1xf32> to vector<4x31xf32>
    %27 = arith.addf %24, %26 : vector<4x31xf32>
    %cst_14 = arith.constant 0.000000e+00 : f32
    %28 = vector.broadcast %cst_14 : f32 to vector<4x31xf32>
    %29 = arith.maximumf %27, %28 : vector<4x31xf32>
    %c0_15 = arith.constant 0 : index
    %c0_16 = arith.constant 0 : index
    %30 = vector.load %arg6[%c0_15, %c0_16] : memref<4x31xf32, #tpu.memory_space<vmem>>, vector<4x31xf32>
    tpu.vector_store %arg6[%c0_15, %c0_16], %29 {strides = array<i32>} : memref<4x31xf32, #tpu.memory_space<vmem>>, vector<4x31xf32>,
    return
  }
  func.func @transform_0(%arg0: i32) -> (i32, i32) {
    %c0_i32 = arith.constant 0 : i32
    %c0_i32_0 = arith.constant 0 : i32
    return %arg0, %c0_i32 : i32, i32
  }
  func.func @transform_1(%arg0: i32) -> (i32, i32) {
    %c0_i32 = arith.constant 0 : i32
    %c0_i32_0 = arith.constant 0 : i32
    %c0_i32_1 = arith.constant 0 : i32
    return %c0_i32, %c0_i32_0 : i32, i32
  }
  func.func @transform_2(%arg0: i32) -> (i32, i32) {
    %c0_i32 = arith.constant 0 : i32
    %c0_i32_0 = arith.constant 0 : i32
    %c0_i32_1 = arith.constant 0 : i32
    return %c0_i32, %c0_i32_0 : i32, i32
  }
  func.func @transform_3(%arg0: i32) -> (i32, i32) {
    %c0_i32 = arith.constant 0 : i32
    %c0_i32_0 = arith.constant 0 : i32
    %c0_i32_1 = arith.constant 0 : i32
    return %c0_i32, %c0_i32_0 : i32, i32
  }
  func.func @transform_4(%arg0: i32) -> (i32, i32) {
    %c0_i32 = arith.constant 0 : i32
    %c0_i32_0 = arith.constant 0 : i32
    %c0_i32_1 = arith.constant 0 : i32
    return %c0_i32, %c0_i32_0 : i32, i32
  }
  func.func @transform_5(%arg0: i32) -> (i32, i32) {
    %c0_i32 = arith.constant 0 : i32
    %c0_i32_0 = arith.constant 0 : i32
    return %c0_i32, %arg0 : i32, i32
  }
}

module attributes {stable_mosaic.version = 11 : i64} {
  func.func @_qnet_head_kernel(%arg0: i32, %arg1: memref<4x16xf32, #tpu.memory_space<vmem>>, %arg2: memref<4x31xf32, #tpu.memory_space<vmem>>, %arg3: memref<16x32xf32, #tpu.memory_space<vmem>>, %arg4: memref<1x32xf32, #tpu.memory_space<vmem>>, %arg5: memref<32x19xf32, #tpu.memory_space<vmem>>, %arg6: memref<1x19xf32, #tpu.memory_space<vmem>>, %arg7: memref<19x32xf32, #tpu.memory_space<vmem>>, %arg8: memref<31x32xf32, #tpu.memory_space<vmem>>, %arg9: memref<1x32xf32, #tpu.memory_space<vmem>>, %arg10: memref<32x4xf32, #tpu.memory_space<vmem>>, %arg11: memref<1x4xf32, #tpu.memory_space<vmem>>, %arg12: memref<4x4xf32, #tpu.memory_space<vmem>>) attributes {dimension_semantics = [#tpu.dimension_semantics<parallel>], iteration_bounds = array<i64: 1>, scalar_prefetch = 0 : i64, scratch_operands = 0 : i64, tpu.core_type = #tpu.core_type<tc>, window_params = [{transform_indices = @transform_0, window_bounds = array<i64: 4, 16>}, {transform_indices = @transform_1, window_bounds = array<i64: 4, 31>}, {pipeline_mode = #tpu.pipeline_mode<synchronous>, transform_indices = @transform_2, window_bounds = array<i64: 16, 32>}, {pipeline_mode = #tpu.pipeline_mode<synchronous>, transform_indices = @transform_3, window_bounds = array<i64: 1, 32>}, {pipeline_mode = #tpu.pipeline_mode<synchronous>, transform_indices = @transform_4, window_bounds = array<i64: 32, 19>}, {pipeline_mode = #tpu.pipeline_mode<synchronous>, transform_indices = @transform_5, window_bounds = array<i64: 1, 19>}, {pipeline_mode = #tpu.pipeline_mode<synchronous>, transform_indices = @transform_6, window_bounds = array<i64: 19, 32>}, {pipeline_mode = #tpu.pipeline_mode<synchronous>, transform_indices = @transform_7, window_bounds = array<i64: 31, 32>}, {pipeline_mode = #tpu.pipeline_mode<synchronous>, transform_indices = @transform_8, window_bounds = array<i64: 1, 32>}, {pipeline_mode = #tpu.pipeline_mode<synchronous>, transform_indices = @transform_9, window_bounds = array<i64: 32, 4>}, {pipeline_mode = #tpu.pipeline_mode<synchronous>, transform_indices = @transform_10, window_bounds = array<i64: 1, 4>}, {transform_indices = @transform_11, window_bounds = array<i64: 4, 4>}]} {
    %c0 = arith.constant 0 : index
    %c0_0 = arith.constant 0 : index
    %0 = vector.load %arg1[%c0, %c0_0] : memref<4x16xf32, #tpu.memory_space<vmem>>, vector<4x16xf32>
    %c0_1 = arith.constant 0 : index
    %c0_2 = arith.constant 0 : index
    %1 = vector.load %arg3[%c0_1, %c0_2] : memref<16x32xf32, #tpu.memory_space<vmem>>, vector<16x32xf32>
    %cst = arith.constant dense<0.000000e+00> : vector<4x32xf32>
    %2 = tpu.matmul %0, %1, %cst {dimension_numbers = #tpu.dot_dimension_numbers<[1], [0], [0], [1], [0, 0, 1, 1], [], []>} : vector<4x16xf32>, vector<16x32xf32>, vector<4x32xf32> -> vector<4x32xf32>
    %c0_3 = arith.constant 0 : index
    %c0_4 = arith.constant 0 : index
    %3 = vector.load %arg4[%c0_3, %c0_4] : memref<1x32xf32, #tpu.memory_space<vmem>>, vector<1x32xf32>
    %4 = vector.broadcast %3 : vector<1x32xf32> to vector<4x32xf32>
    %5 = arith.addf %2, %4 : vector<4x32xf32>
    %cst_5 = arith.constant 0.000000e+00 : f32
    %6 = vector.broadcast %cst_5 : f32 to vector<4x32xf32>
    %7 = arith.maximumf %5, %6 : vector<4x32xf32>
    %c0_6 = arith.constant 0 : index
    %c0_7 = arith.constant 0 : index
    %8 = vector.load %arg5[%c0_6, %c0_7] : memref<32x19xf32, #tpu.memory_space<vmem>>, vector<32x19xf32>
    %cst_8 = arith.constant dense<0.000000e+00> : vector<4x19xf32>
    %9 = tpu.matmul %7, %8, %cst_8 {dimension_numbers = #tpu.dot_dimension_numbers<[1], [0], [0], [1], [0, 0, 1, 1], [], []>} : vector<4x32xf32>, vector<32x19xf32>, vector<4x19xf32> -> vector<4x19xf32>
    %c0_9 = arith.constant 0 : index
    %c0_10 = arith.constant 0 : index
    %10 = vector.load %arg6[%c0_9, %c0_10] : memref<1x19xf32, #tpu.memory_space<vmem>>, vector<1x19xf32>
    %11 = vector.broadcast %10 : vector<1x19xf32> to vector<4x19xf32>
    %12 = arith.addf %9, %11 : vector<4x19xf32>
    %cst_11 = arith.constant 0.000000e+00 : f32
    %13 = vector.broadcast %cst_11 : f32 to vector<4x19xf32>
    %14 = arith.maximumf %12, %13 : vector<4x19xf32>
    %c0_12 = arith.constant 0 : index
    %c0_13 = arith.constant 0 : index
    %15 = vector.load %arg7[%c0_12, %c0_13] : memref<19x32xf32, #tpu.memory_space<vmem>>, vector<19x32xf32>
    %cst_14 = arith.constant dense<0.000000e+00> : vector<4x32xf32>
    %16 = tpu.matmul %14, %15, %cst_14 {dimension_numbers = #tpu.dot_dimension_numbers<[1], [0], [0], [1], [0, 0, 1, 1], [], []>} : vector<4x19xf32>, vector<19x32xf32>, vector<4x32xf32> -> vector<4x32xf32>
    %c0_15 = arith.constant 0 : index
    %c0_16 = arith.constant 0 : index
    %17 = vector.load %arg2[%c0_15, %c0_16] : memref<4x31xf32, #tpu.memory_space<vmem>>, vector<4x31xf32>
    %c0_17 = arith.constant 0 : index
    %c0_18 = arith.constant 0 : index
    %18 = vector.load %arg8[%c0_17, %c0_18] : memref<31x32xf32, #tpu.memory_space<vmem>>, vector<31x32xf32>
    %cst_19 = arith.constant dense<0.000000e+00> : vector<4x32xf32>
    %19 = tpu.matmul %17, %18, %cst_19 {dimension_numbers = #tpu.dot_dimension_numbers<[1], [0], [0], [1], [0, 0, 1, 1], [], []>} : vector<4x31xf32>, vector<31x32xf32>, vector<4x32xf32> -> vector<4x32xf32>
    %20 = arith.addf %16, %19 : vector<4x32xf32>
    %c0_20 = arith.constant 0 : index
    %c0_21 = arith.constant 0 : index
    %21 = vector.load %arg9[%c0_20, %c0_21] : memref<1x32xf32, #tpu.memory_space<vmem>>, vector<1x32xf32>
    %22 = vector.broadcast %21 : vector<1x32xf32> to vector<4x32xf32>
    %23 = arith.addf %20, %22 : vector<4x32xf32>
    %cst_22 = arith.constant 0.000000e+00 : f32
    %24 = vector.broadcast %cst_22 : f32 to vector<4x32xf32>
    %25 = arith.maximumf %23, %24 : vector<4x32xf32>
    %c0_23 = arith.constant 0 : index
    %c0_24 = arith.constant 0 : index
    %26 = vector.load %arg10[%c0_23, %c0_24] : memref<32x4xf32, #tpu.memory_space<vmem>>, vector<32x4xf32>
    %cst_25 = arith.constant dense<0.000000e+00> : vector<4x4xf32>
    %27 = tpu.matmul %25, %26, %cst_25 {dimension_numbers = #tpu.dot_dimension_numbers<[1], [0], [0], [1], [0, 0, 1, 1], [], []>} : vector<4x32xf32>, vector<32x4xf32>, vector<4x4xf32> -> vector<4x4xf32>
    %c0_26 = arith.constant 0 : index
    %c0_27 = arith.constant 0 : index
    %28 = vector.load %arg11[%c0_26, %c0_27] : memref<1x4xf32, #tpu.memory_space<vmem>>, vector<1x4xf32>
    %29 = vector.broadcast %28 : vector<1x4xf32> to vector<4x4xf32>
    %30 = arith.addf %27, %29 : vector<4x4xf32>
    %c0_28 = arith.constant 0 : index
    %c0_29 = arith.constant 0 : index
    %31 = vector.load %arg12[%c0_28, %c0_29] : memref<4x4xf32, #tpu.memory_space<vmem>>, vector<4x4xf32>
    tpu.vector_store %arg12[%c0_28, %c0_29], %30 {strides = array<i32>} : memref<4x4xf32, #tpu.memory_space<vmem>>, vector<4x4xf32>,
    return
  }
  func.func @transform_0(%arg0: i32) -> (i32, i32) {
    %c0_i32 = arith.constant 0 : i32
    %c0_i32_0 = arith.constant 0 : i32
    return %arg0, %c0_i32 : i32, i32
  }
  func.func @transform_1(%arg0: i32) -> (i32, i32) {
    %c0_i32 = arith.constant 0 : i32
    %c0_i32_0 = arith.constant 0 : i32
    return %arg0, %c0_i32 : i32, i32
  }
  func.func @transform_2(%arg0: i32) -> (i32, i32) {
    %c0_i32 = arith.constant 0 : i32
    %c0_i32_0 = arith.constant 0 : i32
    %c0_i32_1 = arith.constant 0 : i32
    return %c0_i32, %c0_i32_0 : i32, i32
  }
  func.func @transform_3(%arg0: i32) -> (i32, i32) {
    %c0_i32 = arith.constant 0 : i32
    %c0_i32_0 = arith.constant 0 : i32
    %c0_i32_1 = arith.constant 0 : i32
    return %c0_i32, %c0_i32_0 : i32, i32
  }
  func.func @transform_4(%arg0: i32) -> (i32, i32) {
    %c0_i32 = arith.constant 0 : i32
    %c0_i32_0 = arith.constant 0 : i32
    %c0_i32_1 = arith.constant 0 : i32
    return %c0_i32, %c0_i32_0 : i32, i32
  }
  func.func @transform_5(%arg0: i32) -> (i32, i32) {
    %c0_i32 = arith.constant 0 : i32
    %c0_i32_0 = arith.constant 0 : i32
    %c0_i32_1 = arith.constant 0 : i32
    return %c0_i32, %c0_i32_0 : i32, i32
  }
  func.func @transform_6(%arg0: i32) -> (i32, i32) {
    %c0_i32 = arith.constant 0 : i32
    %c0_i32_0 = arith.constant 0 : i32
    %c0_i32_1 = arith.constant 0 : i32
    return %c0_i32, %c0_i32_0 : i32, i32
  }
  func.func @transform_7(%arg0: i32) -> (i32, i32) {
    %c0_i32 = arith.constant 0 : i32
    %c0_i32_0 = arith.constant 0 : i32
    %c0_i32_1 = arith.constant 0 : i32
    return %c0_i32, %c0_i32_0 : i32, i32
  }
  func.func @transform_8(%arg0: i32) -> (i32, i32) {
    %c0_i32 = arith.constant 0 : i32
    %c0_i32_0 = arith.constant 0 : i32
    %c0_i32_1 = arith.constant 0 : i32
    return %c0_i32, %c0_i32_0 : i32, i32
  }
  func.func @transform_9(%arg0: i32) -> (i32, i32) {
    %c0_i32 = arith.constant 0 : i32
    %c0_i32_0 = arith.constant 0 : i32
    %c0_i32_1 = arith.constant 0 : i32
    return %c0_i32, %c0_i32_0 : i32, i32
  }
  func.func @transform_10(%arg0: i32) -> (i32, i32) {
    %c0_i32 = arith.constant 0 : i32
    %c0_i32_0 = arith.constant 0 : i32
    %c0_i32_1 = arith.constant 0 : i32
    return %c0_i32, %c0_i32_0 : i32, i32
  }
  func.func @transform_11(%arg0: i32) -> (i32, i32) {
    %c0_i32 = arith.constant 0 : i32
    %c0_i32_0 = arith.constant 0 : i32
    return %arg0, %c0_i32 : i32, i32
  }
}

</mosaic_0001>

<bundles_post_ra>
// kernel: linear_qnet_forward.3
= control target key start
LH: loop header
LB: loop body
LE: loop exit
PB: predicated region body
PF: predicated region fallthrough
CT: control target
= control target key end

     0   :  { %v590_v1 = vmov 0.0   ;;  %vm591_vm0 = vmmov 0   ;;  %s754_s0 = inlined_call_operand.vmem [shape: f32[4,16], index: 0, kind: input, shape index: {}]   ;;  %s755_s1 = inlined_call_operand.vmem [shape: f32[4,31], index: 1, kind: input, shape index: {}]   ;;  %s756_s2 = inlined_call_operand.vmem [shape: f32[16,32], index: 2, kind: input, shape index: {}]   ;;  %s757_s3 = inlined_call_operand.vmem [shape: f32[1,32], index: 3, kind: input, shape index: {}]   ;;  %s758_s4 = inlined_call_operand.vmem [shape: f32[32,19], index: 4, kind: input, shape index: {}]   ;;  %s759_s5 = inlined_call_operand.vmem [shape: f32[1,19], index: 5, kind: input, shape index: {}]   ;;  %s760_s6 = inlined_call_operand.vmem [shape: f32[19,32], index: 6, kind: input, shape index: {}]   ;;  %s761_s7 = inlined_call_operand.vmem [shape: f32[31,32], index: 7, kind: input, shape index: {}]   ;;  %s762_s8 = inlined_call_operand.vmem [shape: f32[1,32], index: 8, kind: input, shape index: {}]   ;;  %s763_s9 = inlined_call_operand.vmem [shape: f32[32,4], index: 9, kind: input, shape index: {}]   ;;  %s764_s10 = inlined_call_operand.vmem [shape: f32[1,4], index: 10, kind: input, shape index: {}]   ;;  %s765_s11 = inlined_call_operand.hbm [shape: f32[4,4], index: 11, kind: output, shape index: {}]  }
   0x1   :  { %v41_v0 = vld [vmem:[%s756_s2 + $0x8] sm:$0xff]  ;;  %516 = vmatprep.subr.mxu1 %v590_v1  ;;  %v40_v2 = vld [vmem:[%s756_s2] sm:$0xff]  ;;  %520 = vmatprep.mubr.msk.f32.mxu1 %vm591_vm0, %v590_v1 }
   0x2   :  { %16 = vsyncpa [#allocation3], 0  ;;  %517 = vmatpush3.msra.mxu1 %v41_v0  ;;  %v39_v3 = vld [vmem:[%s754_s0] sm:$0xf]  ;;  %vm49_vm1 = vcmask 130048   ;;  %534 = vmatprep.subr.mxu0 %v590_v1  ;;  %v127_v4 = vld [vmem:[%s758_s4 + $0x18] sm:$0xff] }
   0x3   :  { %518 = vmatprep.subr.mxu1 %v590_v1  ;;  %542 = vmatprep.mubr.msk.f32.mxu0 %vm591_vm0, %v590_v1  ;;  %v126_v5 = vld [vmem:[%s758_s4 + $0x10] sm:$0xff]  ;;  %v125_v6 = vld [vmem:[%s758_s4 + $0x8] sm:$0xff]  ;;  %v124_v7 = vld [vmem:[%s758_s4] sm:$0xff]  ;;  %vm222_vm2 = vcmask 1046528   ;;  %vm135_vm3 = vcmask 261120   ;;  %vm300_vm4 = vcmask 1042432  }
   0x4   :  { %519 = vmatpush3.msra.mxu1 %v40_v2  ;;  %v217_v8 = vld [vmem:[%s761_s7 + $0x18] sm:$0x7f]  ;;  %v216_v9 = vld [vmem:[%s761_s7 + $0x10] sm:$0xff]  ;;  %v483_v10 = vld [vmem:[%s757_s3] ss:$0 sm:$0xff]  ;;  %vm218_vm5 = vcmask 252928  }
   0x5   :  { %521 = vmatmul.mubr.msk.f32.vlgmr.msra.gmra.mxu1 %vm49_vm1, %v39_v3  ;;  %523 = vmatprep.subr.mxu1 %v590_v1  ;;  %v215_v15 = vld [vmem:[%s761_s7 + $0x8] sm:$0xff]  ;;  %v212_v16 = vld [vmem:[%s760_s6 + $0x10] sm:$0x7]  ;;  %v214_v17 = vld [vmem:[%s761_s7] sm:$0xff]  ;;  %vm296_vm6 = vcmask 154624   ;;  %s592_s4 = smov [#allocation2]  }
   0x6   :  { %524 = vmatpush3.msra.mxu1 %v127_v4  ;;  %531 = vmatprep.mubr.msk.f32.mxu1 %vm591_vm0, %v590_v1  ;;  %v211_v18 = vld [vmem:[%s760_s6 + $0x8] sm:$0xff]  ;;  %v213_v19 = vld [vmem:[%s755_s1] sm:$0xf]  ;;  %v386_v27 = vld [vmem:[%s763_s9 + $0x18] sm:$0xff]  ;;  %s475_s15 = sshll.u32 %s592_s4, 4  ;;  %vm467_vm7 = vcmask 27648   ;;  %s476_s15 = int_to_ptr.vmem [resolvable:$true] %s475_s15 }
   0x7   :  { %525 = vmatprep.subr.mxu1 %v590_v1  ;;  %535 = vmatpush3.msk.msra.mxu0 %vm222_vm2, %v217_v8  ;;  %v210_v20 = vld [vmem:[%s760_s6] sm:$0xff]  ;;  %v385_v29 = vld [vmem:[%s763_s9 + $0x10] sm:$0xff]  ;;  %v384_v30 = vld [vmem:[%s763_s9 + $0x8] sm:$0xff]  ;;  %p573_p1 = scmp.lt.s32.totalorder %s476_s15, %s476_s15 }
   0x8   :  { %526 = vmatpush3.msra.mxu1 %v126_v5  ;;  %536 = vmatprep.subr.mxu0 %v590_v1  ;;  %v485_v21 = vld [vmem:[%s759_s5] ss:$0 sm:$0xff] }
   0x9   :  { %527 = vmatprep.subr.mxu1 %v590_v1  ;;  %537 = vmatpush3.msra.mxu0 %v216_v9  ;;  %v383_v31 = vld [vmem:[%s763_s9] sm:$0xff]  ;;  %s568_s9 = scalar_lea.vmem %s476_s15, 64 }
   0xa   :  { %528 = vmatpush3.msra.mxu1 %v125_v6  ;;  %538 = vmatprep.subr.mxu0 %v590_v1  ;;  %v491_v33 = vld [vmem:[%s762_s8] ss:$0 sm:$0xff]  ;;  %p569_p0 = scmp.ne.s32.totalorder %s476_s15, %s568_s9  ;;  %p574_p2 = scmp.lt.s32.totalorder %s568_s9, %s568_s9 }
   0xb   :  { %529 = vmatprep.subr.mxu1 %v590_v1  ;;  %539 = vmatpush3.msra.mxu0 %v215_v15  ;;  %v492_v38 = vld [vmem:[%s764_s10] ss:$0 sm:$0xff] }
   0xc   :  { %530 = vmatpush3.msra.mxu1 %v124_v7  ;;  %540 = vmatprep.subr.mxu0 %v590_v1  ;;  %p575_p3 = por %p574_p2, %p573_p1 }
   0xd   :  { %545 = vmatprep.subr.mxu1 %v590_v1  ;;  %541 = vmatpush3.msra.mxu0 %v214_v17 }
   0xe   :  { %543 = vmatmul.mubr.msk.f32.vlgmr.msra.gmra.mxu0 %vm218_vm5, %v213_v19  ;;  %554 = vmatprep.subr.mxu0 %v590_v1  ;;  %p576_p4 = pnand %p575_p3, %p569_p0 }
   0xf   :  { %562 = vmatprep.mubr.msk.f32.mxu0 %vm591_vm0, %v590_v1  ;;  %555 = vmatpush3.msra.mxu0 %v386_v27 }
  0x10   :  { %556 = vmatprep.subr.mxu0 %v590_v1 }
  0x11   :  { %557 = vmatpush3.msra.mxu0 %v385_v29 }
  0x12   :  { %558 = vmatprep.subr.mxu0 %v590_v1 }
  0x13   :  { %559 = vmatpush3.msra.mxu0 %v384_v30 }
  0x14   :  { %560 = vmatprep.subr.mxu0 %v590_v1 }
  0x15   :  { %561 = vmatpush3.msra.mxu0 %v383_v31 }
  0xc5   :  { %v119_v11 = vpop.f32.mrf.mxu1 }
  0xc6   :  { %v120_v12 = vadd.f32 %v483_v10, %v119_v11 }
  0xc7   :  { %v522_v13 = vpop.f32.mrf.mxu1 }
  0xc8   :  { %v123_v14 = vmax.f32 %v120_v12, 0.0 }
  0xca   :  { %532 = vmatmul.mubr.msk.f32.vlgmr.msra.gmra.mxu1 %vm135_vm3, %v123_v14 }
  0xcb   :  { %551 = vmatprep.mubr.msk.f32.mxu1 %vm591_vm0, %v590_v1  ;;  %546 = vmatpush3.msk.msra.mxu1 %vm300_vm4, %v212_v16 }
  0xcc   :  { %547 = vmatprep.subr.mxu1 %v590_v1 }
  0xcd   :  { %548 = vmatpush3.msra.mxu1 %v211_v18 }
  0xce   :  { %549 = vmatprep.subr.mxu1 %v590_v1  ;;  %v292_v26 = vpop.f32.mrf.mxu0 }
  0xcf   :  { %550 = vmatpush3.msra.mxu1 %v210_v20 }
  0xd0   :  { %v544_v28 = vpop.f32.mrf.mxu0 }
 0x18a   :  { %v205_v22 = vpop.f32.mrf.mxu1 }
 0x18b   :  { %v206_v23 = vadd.f32 %v485_v21, %v205_v22 }
 0x18c   :  { %v533_v24 = vpop.f32.mrf.mxu1 }
 0x18d   :  { %v209_v25 = vmax.f32 %v206_v23, 0.0 }
 0x18f   :  { %552 = vmatmul.mubr.msk.f32.vlgmr.msra.gmra.mxu1 %vm296_vm6, %v209_v25 }
 0x24f   :  { %v370_v32 = vpop.f32.mrf.mxu1 }
 0x250   :  { %v371_v34 = vadd.f32 %v370_v32, %v292_v26 }
 0x251   :  { %v553_v35 = vpop.f32.mrf.mxu1 }
 0x252   :  { %v381_v36 = vadd.f32 %v491_v33, %v371_v34 }
 0x254   :  { %v382_v37 = vmax.f32 %v381_v36, 0.0 }
 0x256   :  { %563 = vmatmul.mubr.msk.f32.vlgmr.msra.gmra.mxu0 %vm135_vm3, %v382_v37 }
 0x316   :  { %v463_v39 = vpop.f32.mrf.mxu0 }
 0x317   :  { %v464_v40 = vadd.f32 %v492_v38, %v463_v39 }
 0x318   :  { %v564_v41 = vpop.f32.mrf.mxu0 }
 0x319   :  { %468 = vst.msk [vmem:[#allocation2] sm:$0xf] %vm467_vm7, %v464_v40 }
 0x31a   :  { %579 = shalt.err (!%p576_p4)
}
 0x31b   :  { %478 = dma.vmem_to_hbm [thread:$0]  %s476_s15, 64, %s765_s11, [#allocation3]  }
 0x31c   :  { %588 = dma.done.wait [#allocation3], 64  }
 0x31d   :  { %589 = vsyncadd [#allocation3], 4294967232 }
 0x31e   :  { %482 = vsyncpa [#allocation3], 1 }

// kernel: linear_qnet_forward.2
= control target key start
LH: loop header
LB: loop body
LE: loop exit
PB: predicated region body
PF: predicated region fallthrough
CT: control target
= control target key end

     0   :  { %v1028_v0 = vmov 0   ;;  %vm333_vm0 = vcmask 916480   ;;  %vm805_vm1 = vcmask 252928   ;;  %vm890_vm2 = vcmask 1040384   ;;  %s1503_s2 = inlined_call_operand.vmem [shape: f32[256,1], index: 2, kind: input, shape index: {}]   ;;  %s1504_s0 = inlined_call_operand.vmem [shape: f32[31,112], index: 0, kind: input, shape index: {}]   ;;  %s1505_s4 = inlined_call_operand.<no memory space> [shape: f32[1,1], index: 4, kind: input, shape index: {}]   ;;  %s1506_s1 = inlined_call_operand.vmem [shape: bf16[256,112], index: 1, kind: input, shape index: {}]   ;;  %s1507_s3 = inlined_call_operand.vmem [shape: f32[256,1], index: 3, kind: input, shape index: {}]   ;;  %s1508_s5 = inlined_call_operand.vmem [shape: f32[4,31], index: 5, kind: output, shape index: {}]  }
   0x1   :  { %1011 = vset.pattern.permute.xlu1 %v1028_v0  ;;  %1010 = vset.pattern.permute.xlu0 %v1028_v0  ;;  %v63_v1 = vld [vmem:[%s1503_s2 + $0x10] sm:$0xff]  ;;  %v61_v2 = vld [vmem:[%s1503_s2] sm:$0xff]  ;;  %v10_v4 = vstv %s1505_s4  ;;  %v26_v5 = vld [vmem:[%s1504_s0 + $0x18] sm:$0x7f]  ;;  %vm892_vm3 = vcmask 1041408   ;;  %vm894_vm4 = vcmask 1042432  }
   0x2   :  { %v25_v3 = vld [vmem:[%s1504_s0 + $0x10] sm:$0xff]  ;;  %105 = vperm.xlu1 %1011, %v63_v1   ;;  %95 = vperm.xlu0 %1010, %v61_v2   ;;  %11 = vst [vmem:[#allocation2] sm:$0x1] %v10_v4  ;;  %v23_v7 = vld [vmem:[%s1504_s0] sm:$0xff]  ;;  %v64_v8 = vld [vmem:[%s1503_s2 + $0x18] sm:$0xff]  ;;  %vm908_vm5 = vcmask 248832  }
   0x3   :  { %v28_v6 = vpack.c.bf16 %v26_v5, %v25_v3  ;;  %v62_v9 = vld [vmem:[%s1503_s2 + $0x8] sm:$0xff]  ;;  %v1012_v14 = vld [vmem:[%s1506_s1] sm:$0xff]   ;;  %v68_v18 = vld [vmem:[%s1503_s2 + $0x38] sm:$0xff] }
   0x4   :  { %v24_v10 = vld [vmem:[%s1504_s0 + $0x8] sm:$0xff]  ;;  %v1013_v15 = vld [vmem:[%s1506_s1 + $0x40] sm:$0xff]   ;;  %969 = vmatprep.mubr.msk.bf16.mxu0 %vm333_vm0, %v1012_v14  ;;  %v67_v19 = vld [vmem:[%s1503_s2 + $0x30] sm:$0xff] }
   0x5   :  { %1005 = vmatprep.subr.msk.bf16.mxu0 %vm333_vm0, %v28_v6  ;;  %1006 = vmatprep.subr.msk.bf16.mxu1 %vm333_vm0, %v28_v6  ;;  %v386_v11 = vsel %vm333_vm0, %v28_v6, 0  ;;  %v27_v12 = vpack.c.bf16 %v24_v10, %v23_v7  ;;  %v66_v13 = vld [vmem:[%s1503_s2 + $0x28] sm:$0xff]  ;;  %v65_v16 = vld [vmem:[%s1503_s2 + $0x20] sm:$0xff]  ;;  %v1016_v24 = vld [vmem:[%s1506_s1 + $0x10] sm:$0xff]  }
   0x6   :  { %966 = vmatpush3.bf16.xpose.msra.mxu0 %v386_v11  ;;  %1003 = vmatpush3.bf16.xpose.msra.mxu1 %v386_v11  ;;  %v70_v20 = vld [vmem:[%s1503_s2 + $0x48] sm:$0xff]  ;;  %v69_v21 = vld [vmem:[%s1503_s2 + $0x40] sm:$0xff]  ;;  %v1017_v25 = vld [vmem:[%s1506_s1 + $0x50] sm:$0xff]  }
   0x7   :  { %110 = vperm.xlu1 %1011, %v64_v8   ;;  %100 = vperm.xlu0 %1010, %v62_v9   ;;  %v383_v17 = vsel %vm333_vm0, %v27_v12, 0  ;;  %v1014_v22 = vld [vmem:[%s1506_s1 + $0x8] sm:$0xff]   ;;  %v72_v26 = vld [vmem:[%s1503_s2 + $0x58] sm:$0xff]  ;;  %v71_v27 = vld [vmem:[%s1503_s2 + $0x50] sm:$0xff] }
   0x8   :  { %1007 = vmatprep.subr.msk.bf16.mxu0 %vm333_vm0, %v27_v12  ;;  %1008 = vmatprep.subr.msk.bf16.mxu1 %vm333_vm0, %v27_v12  ;;  %v1015_v23 = vld [vmem:[%s1506_s1 + $0x48] sm:$0xff]   ;;  %v73_v29 = vld [vmem:[%s1503_s2 + $0x60] sm:$0xff]  ;;  %v1018_v30 = vld [vmem:[%s1506_s1 + $0x18] sm:$0xff]  }
   0x9   :  { %985 = vmatprep.mubr.msk.bf16.mxu1 %vm333_vm0, %v1013_v15  ;;  %v74_v28 = vld [vmem:[%s1503_s2 + $0x68] sm:$0xff]  ;;  %v1019_v31 = vld [vmem:[%s1506_s1 + $0x58] sm:$0xff]   ;;  %v1020_v32 = vld [vmem:[%s1506_s1 + $0x20] sm:$0xff]  }
   0xa   :  { %v1021_v33 = vld [vmem:[%s1506_s1 + $0x60] sm:$0xff]   ;;  %v76_v34 = vld [vmem:[%s1503_s2 + $0x78] sm:$0xff]  ;;  %v75_v35 = vld [vmem:[%s1503_s2 + $0x70] sm:$0xff] }
   0xb   :  { %120 = vperm.xlu1 %1011, %v66_v13   ;;  %115 = vperm.xlu0 %1010, %v65_v16   ;;  %v78_v36 = vld [vmem:[%s1503_s2 + $0x88] sm:$0xff]  ;;  %v77_v37 = vld [vmem:[%s1503_s2 + $0x80] sm:$0xff]  ;;  %v1024_v40 = vld [vmem:[%s1506_s1 + $0x30] sm:$0xff]  }
   0xc   :  { %v1022_v38 = vld [vmem:[%s1506_s1 + $0x28] sm:$0xff]   ;;  %v1025_v41 = vld [vmem:[%s1506_s1 + $0x70] sm:$0xff]   ;;  %v80_v42 = vld [vmem:[%s1503_s2 + $0x98] sm:$0xff] }
   0xd   :  { %v1023_v39 = vld [vmem:[%s1506_s1 + $0x68] sm:$0xff]   ;;  %v79_v43 = vld [vmem:[%s1503_s2 + $0x90] sm:$0xff]  ;;  %v81_v45 = vld [vmem:[%s1503_s2 + $0xa0] sm:$0xff] }
   0xe   :  { %968 = vmatpush3.bf16.xpose.msra.mxu0 %v383_v17  ;;  %1004 = vmatpush3.bf16.xpose.msra.mxu1 %v383_v17  ;;  %v82_v44 = vld [vmem:[%s1503_s2 + $0xa8] sm:$0xff]  ;;  %v1026_v46 = vld [vmem:[%s1506_s1 + $0x38] sm:$0xff]   ;;  %v83_v49 = vld [vmem:[%s1503_s2 + $0xb0] sm:$0xff] }
   0xf   :  { %130 = vperm.xlu1 %1011, %v68_v18   ;;  %125 = vperm.xlu0 %1010, %v67_v19   ;;  %v1027_v47 = vld [vmem:[%s1506_s1 + $0x78] sm:$0xff]   ;;  %v86_v50 = vld [vmem:[%s1503_s2 + $0xc8] sm:$0xff]  ;;  %v85_v51 = vld [vmem:[%s1503_s2 + $0xc0] sm:$0xff] }
  0x10   :  { %v84_v48 = vld [vmem:[%s1503_s2 + $0xb8] sm:$0xff]  ;;  %v87_v53 = vld [vmem:[%s1503_s2 + $0xd0] sm:$0xff]  ;;  %v90_v54 = vld [vmem:[%s1503_s2 + $0xe8] sm:$0xff] }
  0x11   :  { %v88_v52 = vld [vmem:[%s1503_s2 + $0xd8] sm:$0xff]  ;;  %v89_v55 = vld [vmem:[%s1503_s2 + $0xe0] sm:$0xff]  ;;  %v91_v57 = vld [vmem:[%s1503_s2 + $0xf0] sm:$0xff] }
  0x12   :  { %v92_v56 = vld [vmem:[%s1503_s2 + $0xf8] sm:$0xff]  ;;  %v582_v58 = vld [vmem:[%s1507_s3 + $0x8] sm:$0xff]  ;;  %v581_v59 = vld [vmem:[%s1507_s3] sm:$0xff] }
  0x13   :  { %140 = vperm.xlu1 %1011, %v70_v20   ;;  %135 = vperm.xlu0 %1010, %v69_v21   ;;  %v584_v60 = vld [vmem:[%s1507_s3 + $0x18] sm:$0xff]  ;;  %v583_v61 = vld [vmem:[%s1507_s3 + $0x10] sm:$0xff]  ;;  %v586_v62 = vld [vmem:[%s1507_s3 + $0x28] sm:$0xff] }
  0x14   :  { %v585_v63 = vld [vmem:[%s1507_s3 + $0x20] sm:$0xff]  ;;  %v588_v0 = vld [vmem:[%s1507_s3 + $0x38] sm:$0xff]  ;;  %v587_v1 = vld [vmem:[%s1507_s3 + $0x30] sm:$0xff] }
  0x15   :  { %970 = vmatmul.mubr.msk.bf16.vlgmr.msra.gmra.mxu0 %vm333_vm0, %v1014_v22  ;;  %986 = vmatmul.mubr.msk.bf16.vlgmr.msra.gmra.mxu1 %vm333_vm0, %v1015_v23  ;;  %v590_v2 = vld [vmem:[%s1507_s3 + $0x48] sm:$0xff]  ;;  %v589_v3 = vld [vmem:[%s1507_s3 + $0x40] sm:$0xff]  ;;  %v591_v7 = vld [vmem:[%s1507_s3 + $0x50] sm:$0xff] }
  0x16   :  { %973 = vmatprep.mubr.msk.bf16.mxu0 %vm333_vm0, %v1016_v24  ;;  %989 = vmatprep.mubr.msk.bf16.mxu1 %vm333_vm0, %v1017_v25  ;;  %v598_v4 = vld [vmem:[%s1507_s3 + $0x88] sm:$0xff]  ;;  %v597_v5 = vld [vmem:[%s1507_s3 + $0x80] sm:$0xff]  ;;  %v599_v8 = vld [vmem:[%s1507_s3 + $0x90] sm:$0xff] }
  0x17   :  { %150 = vperm.xlu1 %1011, %v72_v26   ;;  %145 = vperm.xlu0 %1010, %v71_v27   ;;  %v605_v6 = vld [vmem:[%s1507_s3 + $0xc0] sm:$0xff]  ;;  %v606_v9 = vld [vmem:[%s1507_s3 + $0xc8] sm:$0xff]  ;;  %v607_v10 = vld [vmem:[%s1507_s3 + $0xd0] sm:$0xff] }
  0x18   :  { %v592_v11 = vld [vmem:[%s1507_s3 + $0x58] sm:$0xff]  ;;  %v593_v12 = vld [vmem:[%s1507_s3 + $0x60] sm:$0xff]  ;;  %v594_v17 = vld [vmem:[%s1507_s3 + $0x68] sm:$0xff] }
  0x19   :  { %v600_v13 = vld [vmem:[%s1507_s3 + $0x98] sm:$0xff]  ;;  %v601_v14 = vld [vmem:[%s1507_s3 + $0xa0] sm:$0xff]  ;;  %v595_v18 = vld [vmem:[%s1507_s3 + $0x70] sm:$0xff] }
  0x1a   :  { %v608_v15 = vld [vmem:[%s1507_s3 + $0xd8] sm:$0xff]  ;;  %v609_v16 = vld [vmem:[%s1507_s3 + $0xe0] sm:$0xff]  ;;  %v602_v19 = vld [vmem:[%s1507_s3 + $0xa8] sm:$0xff] }
  0x1b   :  { %160 = vperm.xlu1 %1011, %v74_v28   ;;  %155 = vperm.xlu0 %1010, %v73_v29   ;;  %v603_v20 = vld [vmem:[%s1507_s3 + $0xb0] sm:$0xff]  ;;  %v610_v21 = vld [vmem:[%s1507_s3 + $0xe8] sm:$0xff]  ;;  %v596_v23 = vld [vmem:[%s1507_s3 + $0x78] sm:$0xff] }
  0x1c   :  { %v611_v22 = vld [vmem:[%s1507_s3 + $0xf0] sm:$0xff]  ;;  %v612_v24 = vld [vmem:[%s1507_s3 + $0xf8] sm:$0xff]  ;;  %v946_v28 = vld [vmem:[#allocation2] ss:$0 sm:$0xff] }
  0x1d   :  { %974 = vmatmul.mubr.msk.bf16.gmra.mxu0 %vm333_vm0, %v1018_v30  ;;  %990 = vmatmul.mubr.msk.bf16.gmra.mxu1 %vm333_vm0, %v1019_v31  ;;  %v604_v25 = vld [vmem:[%s1507_s3 + $0xb8] sm:$0xff] }
  0x1e   :  { %977 = vmatprep.mubr.msk.bf16.mxu0 %vm333_vm0, %v1020_v32  ;;  %993 = vmatprep.mubr.msk.bf16.mxu1 %vm333_vm0, %v1021_v33 }
  0x1f   :  { %170 = vperm.xlu1 %1011, %v76_v34   ;;  %165 = vperm.xlu0 %1010, %v75_v35  }
  0x23   :  { %180 = vperm.xlu1 %1011, %v78_v36   ;;  %175 = vperm.xlu0 %1010, %v77_v37  }
  0x25   :  { %978 = vmatmul.mubr.msk.bf16.gmra.mxu0 %vm333_vm0, %v1022_v38  ;;  %994 = vmatmul.mubr.msk.bf16.gmra.mxu1 %vm333_vm0, %v1023_v39 }
  0x26   :  { %981 = vmatprep.mubr.msk.bf16.mxu0 %vm333_vm0, %v1024_v40  ;;  %997 = vmatprep.mubr.msk.bf16.mxu1 %vm333_vm0, %v1025_v41 }
  0x27   :  { %190 = vperm.xlu1 %1011, %v80_v42   ;;  %185 = vperm.xlu0 %1010, %v79_v43  }
  0x2b   :  { %200 = vperm.xlu1 %1011, %v82_v44   ;;  %195 = vperm.xlu0 %1010, %v81_v45  }
  0x2d   :  { %982 = vmatmul.mubr.msk.bf16.gmra.mxu0 %vm333_vm0, %v1026_v46  ;;  %998 = vmatmul.mubr.msk.bf16.gmra.mxu1 %vm333_vm0, %v1027_v47 }
  0x2f   :  { %210 = vperm.xlu1 %1011, %v84_v48   ;;  %205 = vperm.xlu0 %1010, %v83_v49  }
  0x33   :  { %220 = vperm.xlu1 %1011, %v86_v50   ;;  %215 = vperm.xlu0 %1010, %v85_v51  }
  0x37   :  { %230 = vperm.xlu1 %1011, %v88_v52   ;;  %225 = vperm.xlu0 %1010, %v87_v53  }
  0x3b   :  { %240 = vperm.xlu1 %1011, %v90_v54   ;;  %235 = vperm.xlu0 %1010, %v89_v55  }
  0x3f   :  { %250 = vperm.xlu1 %1011, %v92_v56   ;;  %245 = vperm.xlu0 %1010, %v91_v57  }
  0x43   :  { %620 = vperm.xlu1 %1011, %v582_v58   ;;  %615 = vperm.xlu0 %1010, %v581_v59  }
  0x47   :  { %630 = vperm.xlu1 %1011, %v584_v60   ;;  %625 = vperm.xlu0 %1010, %v583_v61  }
  0x4b   :  { %640 = vperm.xlu1 %1011, %v586_v62   ;;  %635 = vperm.xlu0 %1010, %v585_v63  }
  0x4f   :  { %650 = vperm.xlu1 %1011, %v588_v0   ;;  %645 = vperm.xlu0 %1010, %v587_v1  }
  0x53   :  { %660 = vperm.xlu1 %1011, %v590_v2   ;;  %655 = vperm.xlu0 %1010, %v589_v3  }
  0x57   :  { %700 = vperm.xlu1 %1011, %v598_v4   ;;  %695 = vperm.xlu0 %1010, %v597_v5  }
  0x5b   :  { %735 = vperm.xlu1 %1011, %v605_v6   ;;  %665 = vperm.xlu0 %1010, %v591_v7  }
  0x5f   :  { %705 = vperm.xlu1 %1011, %v599_v8   ;;  %740 = vperm.xlu0 %1010, %v606_v9  }
  0x63   :  { %745 = vperm.xlu1 %1011, %v607_v10   ;;  %670 = vperm.xlu0 %1010, %v592_v11  }
  0x67   :  { %675 = vperm.xlu1 %1011, %v593_v12   ;;  %710 = vperm.xlu0 %1010, %v600_v13  }
  0x6b   :  { %715 = vperm.xlu1 %1011, %v601_v14   ;;  %750 = vperm.xlu0 %1010, %v608_v15  }
  0x6f   :  { %755 = vperm.xlu1 %1011, %v609_v16   ;;  %680 = vperm.xlu0 %1010, %v594_v17  }
  0x73   :  { %685 = vperm.xlu1 %1011, %v595_v18   ;;  %720 = vperm.xlu0 %1010, %v602_v19  }
  0x77   :  { %725 = vperm.xlu1 %1011, %v603_v20   ;;  %760 = vperm.xlu0 %1010, %v610_v21  }
  0x7b   :  { %765 = vperm.xlu1 %1011, %v611_v22   ;;  %690 = vperm.xlu0 %1010, %v596_v23  }
  0x7d   :  { %v106_v26 = vpop.permute.xlu1 %105  ;;  %v96_v27 = vpop.permute.xlu0 %95 }
  0x7f   :  { %770 = vperm.xlu1 %1011, %v612_v24   ;;  %730 = vperm.xlu0 %1010, %v604_v25  }
  0x82   :  { %v111_v29 = vpop.permute.xlu1 %110  ;;  %v1336_v30 = vpop.permute.xlu0 %100 }
  0x83   :  { %903 = vperm.xlu0 %1010, %v946_v28  }
  0x86   :  { %v1338_v31 = vpop.permute.xlu1 %120  ;;  %v1340_v32 = vpop.permute.xlu0 %115 }
  0x8a   :  { %v1342_v33 = vpop.permute.xlu1 %130  ;;  %v1344_v34 = vpop.permute.xlu0 %125 }
  0x8e   :  { %v1346_v35 = vpop.permute.xlu1 %140  ;;  %v1348_v36 = vpop.permute.xlu0 %135 }
  0x92   :  { %v1350_v37 = vpop.permute.xlu1 %150  ;;  %v1352_v38 = vpop.permute.xlu0 %145 }
  0x96   :  { %v1354_v39 = vpop.permute.xlu1 %160  ;;  %v1356_v40 = vpop.permute.xlu0 %155 }
  0x97   :  { %1509 = vst [vmem:[#allocation3_spill] sm:$0xff] %v1354_v39 }
  0x9a   :  { %v1358_v41 = vpop.permute.xlu1 %170  ;;  %v1360_v42 = vpop.permute.xlu0 %165 }
  0x9e   :  { %v181_v43 = vpop.permute.xlu1 %180  ;;  %v176_v44 = vpop.permute.xlu0 %175 }
  0xa2   :  { %v191_v45 = vpop.permute.xlu1 %190  ;;  %v186_v46 = vpop.permute.xlu0 %185 }
  0xa6   :  { %v1362_v47 = vpop.permute.xlu1 %200  ;;  %v1364_v48 = vpop.permute.xlu0 %195 }
  0xaa   :  { %v1366_v49 = vpop.permute.xlu1 %210  ;;  %v1368_v50 = vpop.permute.xlu0 %205 }
  0xae   :  { %v1370_v51 = vpop.permute.xlu1 %220  ;;  %v1372_v52 = vpop.permute.xlu0 %215 }
  0xb2   :  { %v1374_v53 = vpop.permute.xlu1 %230  ;;  %v1376_v54 = vpop.permute.xlu0 %225 }
  0xb6   :  { %v1378_v55 = vpop.permute.xlu1 %240  ;;  %v1380_v56 = vpop.permute.xlu0 %235 }
  0xb7   :  { %1510 = vst [vmem:[#allocation4_spill] sm:$0xff] %v1378_v55 }
  0xba   :  { %v1382_v57 = vpop.permute.xlu1 %250  ;;  %v1384_v58 = vpop.permute.xlu0 %245 }
  0xbb   :  { %1511 = vst [vmem:[#allocation5_spill] sm:$0xff] %v1382_v57 }
  0xbe   :  { %v621_v59 = vpop.permute.xlu1 %620  ;;  %v616_v60 = vpop.permute.xlu0 %615 }
  0xc2   :  { %v631_v61 = vpop.permute.xlu1 %630  ;;  %v626_v62 = vpop.permute.xlu0 %625 }
  0xc6   :  { %v1386_v63 = vpop.permute.xlu1 %640  ;;  %v1388_v0 = vpop.permute.xlu0 %635 }
  0xca   :  { %v1390_v1 = vpop.permute.xlu1 %650  ;;  %v1392_v2 = vpop.permute.xlu0 %645 }
  0xce   :  { %v1394_v3 = vpop.permute.xlu1 %660  ;;  %v1396_v4 = vpop.permute.xlu0 %655 }
  0xd2   :  { %v701_v5 = vpop.permute.xlu1 %700  ;;  %v696_v6 = vpop.permute.xlu0 %695 }
  0xd5   :  { %v971_v7 = vpop.f32.mrf.mxu0  ;;  %v987_v8 = vpop.f32.mrf.mxu1 }
  0xd6   :  { %v431_v9 = vadd.f32 %v971_v7, %v106_v26  ;;  %v1398_v10 = vpop.permute.xlu1 %735  ;;  %v1400_v11 = vpop.permute.xlu0 %665  ;;  %v495_v15 = vadd.f32 %v987_v8, %v186_v46 }
  0xd7   :  { %v422_v12 = vpop.f32.mrf.mxu0  ;;  %v486_v13 = vpop.f32.mrf.mxu1 }
  0xd8   :  { %v551_v14 = vmax.f32 %v431_v9, 0.0  ;;  %v423_v16 = vadd.f32 %v422_v12, %v96_v27  ;;  %v487_v17 = vadd.f32 %v486_v13, %v176_v44  ;;  %v567_v7 = vmax.f32 %v495_v15, 0.0 }
  0xd9   :  { %v972_v18 = vpop.f32.mrf.mxu0  ;;  %v988_v19 = vpop.f32.mrf.mxu1 }
  0xda   :  { %v549_v20 = vmax.f32 %v423_v16, 0.0  ;;  %v565_v21 = vmax.f32 %v487_v17, 0.0  ;;  %v434_v22 = vadd.f32 %v972_v18, %v111_v29  ;;  %v706_v23 = vpop.permute.xlu1 %705  ;;  %v1402_v24 = vpop.permute.xlu0 %740  ;;  %v775_v28 = vmul.f32 %v626_v62, %v551_v14 }
  0xdb   :  { %v425_v25 = vpop.f32.mrf.mxu0  ;;  %v489_v26 = vpop.f32.mrf.mxu1  ;;  %v498_v55 = vadd.f32 %v988_v19, %v191_v45 }
  0xdc   :  { %v773_v57 = vmul.f32 %v616_v60, %v549_v20  ;;  %v789_v39 = vmul.f32 %v696_v6, %v565_v21  ;;  %v426_v46 = vadd.f32 %v425_v25, %v1336_v30  ;;  %v490_v27 = vadd.f32 %v489_v26, %v181_v43 }
  0xdd   :  { %v975_v44 = vpop.f32.mrf.mxu0  ;;  %v991_v8 = vpop.f32.mrf.mxu1  ;;  %v552_v9 = vmax.f32 %v434_v22, 0.0  ;;  %v809_v45 = vsel %vm805_vm1, %v775_v28, 0.0  ;;  %v568_v60 = vmax.f32 %v498_v55, 0.0  ;;  %v791_v6 = vmul.f32 %v706_v23, %v567_v7 }
  0xde   :  { %v1405_v12 = vpop.permute.xlu1 %745  ;;  %v1407_v29 = vpop.permute.xlu0 %670  ;;  %v550_v13 = vmax.f32 %v426_v46, 0.0  ;;  %v566_v16 = vmax.f32 %v490_v27, 0.0  ;;  %v447_v17 = vadd.f32 %v975_v44, %v1344_v34  ;;  %v806_v43 = vsel %vm805_vm1, %v773_v57, 0.0 }
  0xdf   :  { %v438_v62 = vpop.f32.mrf.mxu0  ;;  %v502_v14 = vpop.f32.mrf.mxu1  ;;  %v848_v15 = vsel %vm805_vm1, %v789_v39, 0.0  ;;  %v776_v22 = vmul.f32 %v631_v61, %v552_v9  ;;  %v851_v7 = vsel %vm805_vm1, %v791_v6, 0.0 }
  0xe0   :  { %v439_v30 = vadd.f32 %v438_v62, %v1340_v32  ;;  %v774_v18 = vmul.f32 %v621_v59, %v550_v13  ;;  %v790_v19 = vmul.f32 %v701_v5, %v566_v16  ;;  %v503_v34 = vadd.f32 %v502_v14, %v1364_v48 }
  0xe1   :  { %v976_v20 = vpop.f32.mrf.mxu0  ;;  %v1414_v21 = vpop.f32.mrf.mxu1  ;;  %v555_v23 = vmax.f32 %v447_v17, 0.0  ;;  %v1425_v48 = vadd.f32 %v991_v8, %v1368_v50  ;;  %v811_v17 = vsel %vm805_vm1, %v776_v22, 0.0 }
  0xe2   :  { %v553_v25 = vmax.f32 %v439_v30, 0.0  ;;  %v450_v26 = vadd.f32 %v976_v20, %v1342_v33  ;;  %v1418_v28 = vpop.permute.xlu1 %675  ;;  %v711_v55 = vpop.permute.xlu0 %710  ;;  %v807_v32 = vsel %vm805_vm1, %v774_v18, 0.0  ;;  %v849_v57 = vsel %vm805_vm1, %v790_v19, 0.0 }
  0xe3   :  { %v792_v39 = vmul.f32 %v711_v55, %v568_v60  ;;  %v441_v59 = vpop.f32.mrf.mxu0  ;;  %v505_v5 = vpop.f32.mrf.mxu1  ;;  %v808_v46 = vadd.f32 %v807_v32, %v806_v43  ;;  %v850_v61 = vadd.f32 %v849_v57, %v848_v15  ;;  %v569_v14 = vmax.f32 %v503_v34, 0.0 }
  0xe4   :  { %v777_v27 = vmul.f32 %v1388_v0, %v553_v25  ;;  %v556_v33 = vmax.f32 %v450_v26, 0.0  ;;  %v442_v9 = vadd.f32 %v441_v59, %v1338_v31  ;;  %v779_v0 = vmul.f32 %v1392_v2, %v555_v23 }
  0xe5   :  { %v853_v44 = vsel %vm805_vm1, %v792_v39, 0.0  ;;  %v979_v13 = vpop.f32.mrf.mxu0  ;;  %v995_v16 = vpop.f32.mrf.mxu1  ;;  %v810_v62 = vadd.f32 %v809_v45, %v808_v46  ;;  %v852_v60 = vadd.f32 %v851_v7, %v850_v61 }
  0xe6   :  { %v716_v6 = vpop.permute.xlu1 %715  ;;  %v1430_v30 = vpop.permute.xlu0 %750  ;;  %v554_v43 = vmax.f32 %v442_v9, 0.0  ;;  %v463_v50 = vadd.f32 %v979_v13, %v1352_v38  ;;  %v527_v8 = vadd.f32 %v995_v16, %v1376_v54  ;;  %v813_v19 = vsel %vm805_vm1, %v777_v27, 0.0 }
  0xe7   :  { %v454_v15 = vpop.f32.mrf.mxu0  ;;  %v518_v18 = vpop.f32.mrf.mxu1  ;;  %v812_v31 = vadd.f32 %v811_v17, %v810_v62  ;;  %v854_v20 = vadd.f32 %v853_v44, %v852_v60  ;;  %v793_v22 = vmul.f32 %v716_v6, %v569_v14  ;;  %v780_v45 = vmul.f32 %v1390_v1, %v556_v33 }
  0xe8   :  { %v778_v25 = vmul.f32 %v1386_v63, %v554_v43  ;;  %v559_v34 = vmax.f32 %v463_v50, 0.0  ;;  %v575_v26 = vmax.f32 %v527_v8, 0.0  ;;  %v455_v54 = vadd.f32 %v454_v15, %v1348_v36 }
  0xe9   :  { %v980_v55 = vpop.f32.mrf.mxu0  ;;  %v996_v2 = vpop.f32.mrf.mxu1  ;;  %v814_v32 = vadd.f32 %v813_v19, %v812_v31  ;;  %v855_v38 = vsel %vm805_vm1, %v793_v22, 0.0  ;;  %v519_v57 = vadd.f32 %v518_v18, %v1372_v52  ;;  %v817_v59 = vsel %vm805_vm1, %v779_v0, 0.0 }
  0xea   :  { %v1441_v23 = vpop.permute.xlu1 %755  ;;  %v1443_v39 = vpop.permute.xlu0 %680  ;;  %v815_v1 = vsel %vm805_vm1, %v778_v25, 0.0  ;;  %v506_v63 = vadd.f32 %v505_v5, %v1362_v47  ;;  %v856_v7 = vadd.f32 %v855_v38, %v854_v20  ;;  %v557_v33 = vmax.f32 %v455_v54, 0.0 }
  0xeb   :  { %v457_v46 = vpop.f32.mrf.mxu0  ;;  %v521_v61 = vpop.f32.mrf.mxu1  ;;  %v816_v27 = vadd.f32 %v815_v1, %v814_v32  ;;  %v573_v44 = vmax.f32 %v519_v57, 0.0  ;;  %v466_v36 = vadd.f32 %v980_v55, %v1350_v37  ;;  %v819_v52 = vsel %vm805_vm1, %v780_v45, 0.0 }
  0xec   :  { %v783_v9 = vmul.f32 %v1400_v11, %v559_v34  ;;  %v530_v13 = vadd.f32 %v996_v2, %v1374_v53  ;;  %v458_v16 = vadd.f32 %v457_v46, %v1346_v35  ;;  %v799_v47 = vmul.f32 %v1405_v12, %v575_v26 }
  0xed   :  { %v983_v17 = vpop.f32.mrf.mxu0  ;;  %v999_v62 = vpop.f32.mrf.mxu1  ;;  %v818_v14 = vadd.f32 %v817_v59, %v816_v27  ;;  %v781_v5 = vmul.f32 %v1396_v4, %v557_v33  ;;  %v560_v60 = vmax.f32 %v466_v36, 0.0  ;;  %v797_v37 = vmul.f32 %v1398_v10, %v573_v44 }
  0xee   :  { %v1455_v6 = vpop.permute.xlu1 %685  ;;  %v721_v0 = vpop.permute.xlu0 %720  ;;  %v576_v43 = vmax.f32 %v530_v13, 0.0  ;;  %v558_v50 = vmax.f32 %v458_v16, 0.0  ;;  %v522_v11 = vadd.f32 %v521_v61, %v1370_v51  ;;  %v571_v35 = vmax.f32 %v1425_v48, 0.0  ;;  %v1512_v16 = vld [vmem:[#allocation3_spill] sm:$0xff] }
  0xef   :  { %v470_v53 = vpop.f32.mrf.mxu0  ;;  %v820_v8 = vadd.f32 %v819_v52, %v818_v14  ;;  %v570_v15 = vmax.f32 %v506_v63, 0.0  ;;  %v479_v18 = vadd.f32 %v983_v17, %v1360_v42  ;;  %v534_v12 = vpop.f32.mrf.mxu1  ;;  %v1463_v4 = vadd.f32 %v1414_v21, %v1366_v49 }
  0xf0   :  { %v784_v31 = vmul.f32 %v1407_v29, %v560_v60  ;;  %v782_v10 = vmul.f32 %v1394_v3, %v558_v50  ;;  %v574_v19 = vmax.f32 %v522_v11, 0.0  ;;  %v830_v51 = vsel %vm805_vm1, %v783_v9, 0.0  ;;  %v1514_v50 = vld [vmem:[#allocation4_spill] sm:$0xff] }
  0xf1   :  { %v984_v20 = vpop.f32.mrf.mxu0  ;;  %v872_v22 = vsel %vm805_vm1, %v799_v47, 0.0  ;;  %v827_v48 = vsel %vm805_vm1, %v781_v5, 0.0  ;;  %v794_v45 = vmul.f32 %v721_v0, %v570_v15  ;;  %v869_v34 = vsel %vm805_vm1, %v797_v37, 0.0  ;;  %v1000_v32 = vpop.f32.mrf.mxu1 }
  0xf2   :  { %v726_v25 = vpop.permute.xlu1 %725  ;;  %v761_v42 = vpop.permute.xlu0 %760  ;;  %v800_v49 = vmul.f32 %v1430_v30, %v576_v43  ;;  %v828_v21 = vsel %vm805_vm1, %v782_v10, 0.0  ;;  %v798_v29 = vmul.f32 %v1402_v24, %v574_v19  ;;  %v821_v3 = vrot.slane %v820_v8, 4 }
  0xf3   :  { %v829_v26 = vadd.f32 %v828_v21, %v827_v48  ;;  %v563_v55 = vmax.f32 %v479_v18, 0.0  ;;  %v857_v2 = vsel %vm805_vm1, %v794_v45, 0.0  ;;  %v832_v38 = vsel %vm805_vm1, %v784_v31, 0.0  ;;  %v473_v1 = vpop.f32.mrf.mxu0  ;;  %v537_v17 = vpop.f32.mrf.mxu1 }
  0xf4   :  { %v870_v54 = vsel %vm805_vm1, %v798_v29, 0.0  ;;  %v858_v57 = vadd.f32 %v857_v2, %v856_v7  ;;  %v471_v59 = vadd.f32 %v470_v53, %v1356_v40  ;;  %v543_v46 = vadd.f32 %v999_v62, %v1384_v58  ;;  %v1513_v58 = vld [vmem:[#allocation5_spill] sm:$0xff] }
  0xf5   :  { %v831_v63 = vadd.f32 %v830_v51, %v829_v26  ;;  %v871_v30 = vadd.f32 %v870_v54, %v869_v34  ;;  %v535_v24 = vadd.f32 %v534_v12, %v1380_v56  ;;  %v874_v33 = vsel %vm805_vm1, %v800_v49, 0.0 }
  0xf6   :  { %v766_v61 = vpop.permute.xlu1 %765  ;;  %v691_v27 = vpop.permute.xlu0 %690  ;;  %v561_v44 = vmax.f32 %v471_v59, 0.0  ;;  %v482_v36 = vadd.f32 %v984_v20, %v1358_v41  ;;  %v795_v52 = vmul.f32 %v726_v25, %v571_v35  ;;  %v474_v40 = vadd.f32 %v473_v1, %v1512_v16 }
  0xf7   :  { %v873_v9 = vadd.f32 %v872_v22, %v871_v30  ;;  %v833_v13 = vadd.f32 %v832_v38, %v831_v63  ;;  %v577_v7 = vmax.f32 %v535_v24, 0.0  ;;  %v546_v62 = vadd.f32 %v1000_v32, %v1513_v58 }
  0xf8   :  { %v785_v14 = vmul.f32 %v1418_v28, %v561_v44  ;;  %v564_v47 = vmax.f32 %v482_v36, 0.0  ;;  %v859_v56 = vsel %vm805_vm1, %v795_v52, 0.0  ;;  %v562_v37 = vmax.f32 %v474_v40, 0.0 }
  0xf9   :  { %v801_v5 = vmul.f32 %v1441_v23, %v577_v7  ;;  %v875_v60 = vadd.f32 %v874_v33, %v873_v9  ;;  %v860_v0 = vadd.f32 %v859_v56, %v858_v57  ;;  %v572_v41 = vmax.f32 %v1463_v4, 0.0 }
  0xfa   :  { %v834_v43 = vsel %vm805_vm1, %v785_v14, 0.0  ;;  %v538_v11 = vadd.f32 %v537_v17, %v1514_v50  ;;  %v731_v53 = vpop.permute.xlu0 %730  ;;  %v822_v35 = vadd.f32 %v821_v3, %v820_v8  ;;  %v787_v28 = vmul.f32 %v1455_v6, %v563_v55  ;;  %v771_v12 = vpop.permute.xlu1 %770 }
  0xfb   :  { %v835_v15 = vadd.f32 %v834_v43, %v833_v13  ;;  %v786_v18 = vmul.f32 %v1443_v39, %v562_v37  ;;  %v579_v31 = vmax.f32 %v543_v46, 0.0  ;;  %v876_v23 = vsel %vm805_vm1, %v801_v5, 0.0 }
  0xfc   :  { %v580_v10 = vmax.f32 %v546_v62, 0.0  ;;  %v578_v19 = vmax.f32 %v538_v11, 0.0  ;;  %v877_v20 = vadd.f32 %v876_v23, %v875_v60  ;;  %v788_v51 = vmul.f32 %v691_v27, %v564_v47 }
  0xfd   :  { %v836_v4 = vsel %vm805_vm1, %v786_v18, 0.0  ;;  %v796_v22 = vmul.f32 %v731_v53, %v572_v41  ;;  %v803_v25 = vmul.f32 %v766_v61, %v579_v31  ;;  %v838_v6 = vsel %vm805_vm1, %v787_v28, 0.0 }
  0xfe   :  { %v837_v48 = vadd.f32 %v836_v4, %v835_v15  ;;  %v802_v45 = vmul.f32 %v761_v42, %v578_v19  ;;  %v804_v8 = vmul.f32 %v771_v12, %v580_v10  ;;  %v823_v29 = vrot.slane %v822_v35, 2  ;;  %v904_v62 = vpop.permute.xlu0 %903 }
  0xff   :  { %v861_v34 = vsel %vm805_vm1, %v796_v22, 0.0  ;;  %v840_v26 = vsel %vm805_vm1, %v788_v51, 0.0  ;;  %v880_v55 = vsel %vm805_vm1, %v803_v25, 0.0 }
 0x100   :  { %v878_v39 = vsel %vm805_vm1, %v802_v45, 0.0  ;;  %v839_v49 = vadd.f32 %v838_v6, %v837_v48  ;;  %v862_v21 = vadd.f32 %v861_v34, %v860_v0  ;;  %v882_v32 = vsel %vm805_vm1, %v804_v8, 0.0 }
 0x101   :  { %v879_v3 = vadd.f32 %v878_v39, %v877_v20  ;;  %v824_v30 = vadd.f32 %v823_v29, %v822_v35 }
 0x102   :  { %v841_v2 = vadd.f32 %v840_v26, %v839_v49  ;;  %v863_v42 = vrot.slane %v862_v21, 4 }
 0x103   :  { %v881_v38 = vadd.f32 %v880_v55, %v879_v3  ;;  %v825_v44 = vrot.slane %v824_v30, 1 }
 0x104   :  { %v842_v54 = vrot.slane %v841_v2, 4  ;;  %v864_v57 = vadd.f32 %v863_v42, %v862_v21 }
 0x105   :  { %v883_v59 = vadd.f32 %v882_v32, %v881_v38  ;;  %v826_v16 = vadd.f32 %v825_v44, %v824_v30 }
 0x106   :  { %v843_v1 = vadd.f32 %v842_v54, %v841_v2  ;;  %v865_v63 = vrot.slane %v864_v57, 2 }
 0x107   :  { %v884_v46 = vrot.slane %v883_v59, 4 }
 0x108   :  { %v844_v24 = vrot.slane %v843_v1, 2  ;;  %v866_v61 = vadd.f32 %v865_v63, %v864_v57 }
 0x109   :  { %v885_v27 = vadd.f32 %v884_v46, %v883_v59 }
 0x10a   :  { %v845_v33 = vadd.f32 %v844_v24, %v843_v1  ;;  %v867_v52 = vrot.slane %v866_v61, 1 }
 0x10b   :  { %v886_v36 = vrot.slane %v885_v27, 2 }
 0x10c   :  { %v846_v9 = vrot.slane %v845_v33, 1  ;;  %v868_v40 = vadd.f32 %v867_v52, %v866_v61 }
 0x10d   :  { %v887_v13 = vadd.f32 %v886_v36, %v885_v27 }
 0x10e   :  { %v847_v7 = vadd.f32 %v846_v9, %v845_v33 }
 0x10f   :  { %v888_v17 = vrot.slane %v887_v13, 1 }
 0x110   :  { %v891_v14 = vsel %vm890_vm2, %v826_v16, %v847_v7 }
 0x111   :  { %v889_v47 = vadd.f32 %v888_v17, %v887_v13  ;;  %v893_v58 = vsel %vm892_vm3, %v891_v14, %v868_v40 }
 0x113   :  { %v895_v56 = vsel %vm894_vm4, %v893_v58, %v889_v47 }
 0x114   :  { %v906_v5 = vadd.f32 %v904_v62, %v895_v56 }
 0x116   :  { %v907_v60 = vmax.f32 %v906_v5, 0.0 }
 0x118   :  { %909 = vst.msk [vmem:[%s1508_s5] sm:$0xf] %vm908_vm5, %v907_v60 }

</bundles_post_ra>
